<compile_context>
chip_gen: v6e
topology: v6e:2x2x1
jax: 0.10.0
libtpu: 0.0.40
codegen_flags: <defaults>
</compile_context>

<pallas_src>
import functools
import math

import jax
import jax.numpy as jnp
from jax.experimental import pallas as pl
from jax.experimental.pallas import tpu as pltpu


# Safe on v5e/v6e (128 MiB physical) and v7x (64 MiB physical).
_VMEM_LIMIT = 48 * 1024 * 1024


def _pad_to(x, multiple, axis):
    size = x.shape[axis]
    pad = (-size) % multiple
    if pad == 0:
        return x
    widths = [(0, 0)] * x.ndim
    widths[axis] = (0, pad)
    return jnp.pad(x, widths)


# ---------------------------------------------------------------------------
# Tiled linear projection:  y = x @ w + b
# ---------------------------------------------------------------------------

def _linear_kernel(x_ref, w_ref, b_ref, o_ref, *scratch, mxu_dtype):
    # f32 outputs: accumulate directly into the resident output block.
    # non-f32 outputs: accumulate in the f32 scratch, cast on the last k step.
    acc_ref = scratch[0] if scratch else o_ref

    @pl.when(pl.program_id(2) == 0)
    def _():
        # bias folded into the init instead of a finalize add
        acc_ref[...] = jnp.broadcast_to(b_ref[...].astype(jnp.float32),
                                        acc_ref.shape)

    a = x_ref[...]
    w = w_ref[...]
    if mxu_dtype is not None:  # bf16 operands for v6e/v7x MXU peak
        a = a.astype(mxu_dtype)
        w = w.astype(mxu_dtype)
    acc_ref[...] += jnp.dot(a, w, preferred_element_type=jnp.float32)

    if scratch:
        @pl.when(pl.program_id(2) == pl.num_programs(2) - 1)
        def _():
            o_ref[...] = acc_ref[...].astype(o_ref.dtype)


def _linear(x2d, w, bias, *, tm=512, tn=512, tk=512, mxu_dtype=None,
            out_dtype=None):
    """x2d: (M, K) @ w: (K, N) + bias: (N,) via a tiled, pipelined Pallas kernel."""
    out_dtype = x2d.dtype if out_dtype is None else out_dtype
    m0, k0 = x2d.shape
    n0 = w.shape[1]
    # full extent when small (valid full-dim block), else aligned tile + pad
    tm = m0 if m0 <= tm else tm
    tk = k0 if k0 <= tk else tk
    tn = n0 if n0 <= tn else tn

    x_p = _pad_to(_pad_to(x2d, tm, 0), tk, 1)
    w_p = _pad_to(_pad_to(w, tk, 0), tn, 1)
    b_p = _pad_to(bias.reshape(1, n0), tn, 1)
    m, kk = x_p.shape
    n = w_p.shape[1]

    use_scratch = jnp.dtype(out_dtype) != jnp.dtype(jnp.float32)
    scratch_shapes = [pltpu.VMEM((tm, tn), jnp.float32)] if use_scratch else []

    out = pl.pallas_call(
        functools.partial(_linear_kernel, mxu_dtype=mxu_dtype),
        out_shape=jax.ShapeDtypeStruct((m, n), out_dtype),
        grid_spec=pltpu.PrefetchScalarGridSpec(
            num_scalar_prefetch=0,
            grid=(m // tm, n // tn, kk // tk),
            in_specs=[
                pl.BlockSpec((tm, tk), lambda i, j, k: (i, k)),
                pl.BlockSpec((tk, tn), lambda i, j, k: (k, j)),
                pl.BlockSpec((1, tn), lambda i, j, k: (0, j)),
            ],
            out_specs=pl.BlockSpec((tm, tn), lambda i, j, k: (i, j)),
            scratch_shapes=scratch_shapes,
        ),
        compiler_params=pltpu.CompilerParams(
            dimension_semantics=("parallel", "parallel", "arbitrary"),
            vmem_limit_bytes=_VMEM_LIMIT,
        ),
    )(x_p, w_p, b_p)
    return out[:m0, :n0]


# ---------------------------------------------------------------------------
# Scaled-dot-product attention, (B, L, E)-layout in and out
# ---------------------------------------------------------------------------

def _attn_kernel(q_ref, k_ref, v_ref, m_ref, o_ref, *rest, head_dim,
                 with_weights, approx_recip, mxu_dtype, clamp_min, clamp_max):
    w_ref = rest[0] if with_weights else None
    tq = q_ref.shape[1]
    src = k_ref.shape[1]
    h = q_ref.shape[2] // head_dim

    # (1, L, h*hd) -> (h, L, hd): vreg-level split, no HBM traffic.
    def to_heads(ref):
        x = ref[0].reshape(ref.shape[1], h, head_dim)
        return jnp.swapaxes(x, 0, 1)

    q = to_heads(q_ref)          # (h, tq, hd) -- scale already folded into q_proj
    k = to_heads(k_ref)          # (h, src, hd)
    v = to_heads(v_ref)          # (h, src, hd)
    if mxu_dtype is not None:
        q = q.astype(mxu_dtype)
        k = k.astype(mxu_dtype)
        v = v.astype(mxu_dtype)

    # QK^T, batched over heads (no in-kernel .T)
    s = jnp.einsum("hqd,hkd->hqk", q, k, preferred_element_type=jnp.float32)
    if clamp_min:
        s = jnp.maximum(s, jnp.float32(-50000.0))
    if clamp_max:
        s = jnp.minimum(s, jnp.float32(50000.0))
    s = s + m_ref[...]                       # (1, 1, src) broadcast over (h, tq)

    # softmax along src in f32; keep temporaries to a minimum
    s = s - jnp.max(s, axis=-1, keepdims=True)
    p = jnp.exp(s)
    denom = jnp.sum(p, axis=-1, keepdims=True)
    if approx_recip:
        probs = p * pl.reciprocal(denom, approx=True)   # EUP slot (perf path)
    else:
        probs = p / denom                               # exact (matches PyTorch f32)

    if with_weights:
        w_ref[0] = probs.astype(w_ref.dtype)

    # TODO(synk): dropout on attn_probs skipped (module evaluated in eval mode).
    # TODO(synk): for very long src, switch to a src-tiled online softmax.
    pv_dtype = v.dtype
    o = jnp.einsum("hqk,hkd->hqd", probs.astype(pv_dtype), v,
                   preferred_element_type=jnp.float32)   # (h, tq, hd)
    # lane-dense store: (h, tq, hd) -> (tq, h*hd)
    o = jnp.swapaxes(o, 0, 1).reshape(tq, h * head_dim)
    o_ref[0] = o.astype(o_ref.dtype)


def _choose_h_tile(num_heads, head_dim, src, tq, act_bytes, with_weights):
    """Largest legal head tile whose per-step VMEM footprint fits the budget."""
    cands = [h for h in range(1, num_heads + 1)
             if num_heads % h == 0
             and ((h * head_dim) % 128 == 0 or h == num_heads)]
    budget = 24 * 1024 * 1024   # leave pipelining headroom under _VMEM_LIMIT
    for h in sorted(cands, reverse=True):
        kv = 2 * 2 * src * h * head_dim * act_bytes        # K+V, double-buffered
        qo = 2 * 2 * tq * h * head_dim * act_bytes         # Q + O blocks
        tmp = 2 * h * tq * src * 4                         # live softmax f32 temps
        wout = (2 * h * tq * src * act_bytes) if with_weights else 0
        if kv + qo + tmp + wout <= budget:
            return h
    return min(cands)


def _attention(q_e, k_e, v_e, add_mask, num_heads, *, tq=256, h_tile=None,
               mxu_dtype=None, return_weights=True, clamp_min=False,
               clamp_max=False):
    """q_e: (B, tgt, E); k_e/v_e: (B, src, E); add_mask: (B, 1, src)."""
    b, tgt0, e = q_e.shape
    src = k_e.shape[1]
    hd = e // num_heads
    tq = tgt0 if tgt0 <= tq else tq
    q_p = _pad_to(q_e, tq, 1)
    tgt = q_p.shape[1]

    if h_tile is None:
        h_tile = _choose_h_tile(num_heads, hd, src, tq,
                                jnp.dtype(q_e.dtype).itemsize, return_weights)
    h_blk = h_tile * hd
    n_h = num_heads // h_tile

    out_shape = [jax.ShapeDtypeStruct((b, tgt, e), q_e.dtype)]
    out_specs = [pl.BlockSpec((1, tq, h_blk), lambda i, hj, qi: (i, qi, hj))]
    if return_weights:
        out_shape.append(
            jax.ShapeDtypeStruct((b, num_heads, tgt, src), q_e.dtype))
        out_specs.append(
            pl.BlockSpec((1, h_tile, tq, src), lambda i, hj, qi: (i, hj, qi, 0)))

    res = pl.pallas_call(
        functools.partial(_attn_kernel, head_dim=hd,
                          with_weights=return_weights,
                          approx_recip=(mxu_dtype is not None),
                          mxu_dtype=mxu_dtype,
                          clamp_min=clamp_min, clamp_max=clamp_max),
        out_shape=tuple(out_shape),
        grid_spec=pltpu.PrefetchScalarGridSpec(
            num_scalar_prefetch=0,
            grid=(b, n_h, tgt // tq),
            in_specs=[
                pl.BlockSpec((1, tq, h_blk), lambda i, hj, qi: (i, qi, hj)),
                pl.BlockSpec((1, src, h_blk), lambda i, hj, qi: (i, 0, hj)),
                pl.BlockSpec((1, src, h_blk), lambda i, hj, qi: (i, 0, hj)),
                pl.BlockSpec((1, 1, src), lambda i, hj, qi: (i, 0, 0)),
            ],
            out_specs=tuple(out_specs),
        ),
        compiler_params=pltpu.CompilerParams(
            dimension_semantics=("parallel", "parallel", "parallel"),
            vmem_limit_bytes=_VMEM_LIMIT,
        ),
    )(q_p, k_e, v_e, add_mask)

    if return_weights:
        out, weights = res
        return out[:, :tgt0], weights[:, :, :tgt0]
    out = res[0] if isinstance(res, (tuple, list)) else res
    return out[:, :tgt0], None


# ---------------------------------------------------------------------------
# Module wrapper
# ---------------------------------------------------------------------------

def init_params(key, q_dim, k_dim, embed_dim):
    """Xavier-uniform weights, zero biases (like _reset_parameters)."""
    def xavier(key, fan_in, fan_out):
        bound = math.sqrt(6.0 / (fan_in + fan_out))
        # stored as (in, out) so forward is x @ w + b
        return jax.random.uniform(key, (fan_in, fan_out), jnp.float32, -bound, bound)

    kq, kk, kv, ko = jax.random.split(key, 4)
    return {
        "q_w": xavier(kq, q_dim, embed_dim), "q_b": jnp.zeros((embed_dim,), jnp.float32),
        "k_w": xavier(kk, k_dim, embed_dim), "k_b": jnp.zeros((embed_dim,), jnp.float32),
        "v_w": xavier(kv, k_dim, embed_dim), "v_b": jnp.zeros((embed_dim,), jnp.float32),
        "o_w": xavier(ko, embed_dim, q_dim), "o_b": jnp.zeros((q_dim,), jnp.float32),
    }


def multi_head_attention(params, q, k, v, num_heads, attention_mask=None,
                         mxu_dtype=None, return_weights=True,
                         clamp_min_for_underflow=False,
                         clamp_max_for_overflow=False):
    """Forward pass matching MultiHeadAttention.forward (eval mode).

    Returns (attn_output: (bsz, tgt, q_dim), attn_weights: (bsz*H, tgt, src) or None).
    Set mxu_dtype=jnp.bfloat16 for the bf16 MXU fast path (bf16 activations,
    approx-reciprocal softmax); default None is full f32 / exact softmax.
    """
    bsz, tgt_len, q_dim = q.shape
    _, src_len, _ = k.shape
    embed_dim = params["q_w"].shape[1]
    head_dim = embed_dim // num_heads
    scale = head_dim ** (-0.5)

    act_dtype = mxu_dtype if mxu_dtype is not None else q.dtype

    # Fold the query scale into the q projection: (x@W + b)*scale == x@(W*s) + b*s.
    q_w = params["q_w"] * scale
    q_b = params["q_b"] * scale

    # projections (tiled Pallas matmul kernel); outputs in act_dtype so the
    # attention kernel DMAs bf16 on the perf path.
    q_p = _linear(q.reshape(bsz * tgt_len, q_dim), q_w, q_b,
                  mxu_dtype=mxu_dtype, out_dtype=act_dtype)
    k_p = _linear(k.reshape(bsz * src_len, -1), params["k_w"], params["k_b"],
                  mxu_dtype=mxu_dtype, out_dtype=act_dtype)
    v_p = _linear(v.reshape(bsz * src_len, -1), params["v_w"], params["v_b"],
                  mxu_dtype=mxu_dtype, out_dtype=act_dtype)

    # Keep (B, L, E) layout: head split/merge happens inside the attention
    # kernel, so no XLA transposes and lane-dense loads/stores.
    q_e = q_p.reshape(bsz, tgt_len, embed_dim)
    k_e = k_p.reshape(bsz, src_len, embed_dim)
    v_e = v_p.reshape(bsz, src_len, embed_dim)

    # additive mask per PyTorch: masked_fill(mask == 0, -9e15) then add (keeps
    # original nonzero mask values, exactly like the module).
    if attention_mask is None:
        add_mask = jnp.zeros((bsz, 1, src_len), jnp.float32)
    else:
        am = attention_mask.astype(jnp.float32)
        add_mask = jnp.where(am == 0, jnp.float32(-9e15), am).reshape(bsz, 1, src_len)

    attn_out, attn_w = _attention(q_e, k_e, v_e, add_mask, num_heads,
                                  mxu_dtype=mxu_dtype,
                                  return_weights=return_weights,
                                  clamp_min=clamp_min_for_underflow,
                                  clamp_max=clamp_max_for_overflow)

    # output projection: attn_out is already (B, T, E) lane-dense, no transpose.
    out = _linear(attn_out.reshape(bsz * tgt_len, embed_dim),
                  params["o_w"], params["o_b"], mxu_dtype=mxu_dtype,
                  out_dtype=q.dtype)
    out = out.reshape(bsz, tgt_len, q_dim)

    if attn_w is not None:
        attn_w = attn_w.reshape(bsz * num_heads, tgt_len, src_len)
    return out, attn_w


# ---------------------------------------------------------------------------
# Pure-JAX reference for the correctness check
# ---------------------------------------------------------------------------

def _reference(params, q, k, v, num_heads, attention_mask=None):
    bsz, tgt_len, q_dim = q.shape
    _, src_len, _ = k.shape
    embed_dim = params["q_w"].shape[1]
    head_dim = embed_dim // num_heads
    scale = head_dim ** (-0.5)

    qp = (q @ params["q_w"] + params["q_b"]) * scale
    kp = k @ params["k_w"] + params["k_b"]
    vp = v @ params["v_w"] + params["v_b"]

    def to_heads(x, L):
        return (x.reshape(bsz, L, num_heads, head_dim).transpose(0, 2, 1, 3)
                 .reshape(bsz * num_heads, L, head_dim))

    qh, kh, vh = to_heads(qp, tgt_len), to_heads(kp, src_len), to_heads(vp, src_len)
    s = jnp.einsum("btd,bsd->bts", qh, kh)
    if attention_mask is not None:
        am = attention_mask.astype(jnp.float32)
        am = jnp.where(am == 0, jnp.float32(-9e15), am)
        s = (s.reshape(bsz, num_heads, tgt_len, src_len) + am[:, None, None, :]) \
             .reshape(bsz * num_heads, tgt_len, src_len)
    w = jax.nn.softmax(s, axis=-1)
    o = jnp.einsum("bts,bsd->btd", w, vh)
    o = (o.reshape(bsz, num_heads, tgt_len, head_dim).transpose(0, 2, 1, 3)
          .reshape(bsz, tgt_len, embed_dim))
    return o @ params["o_w"] + params["o_b"], w


if __name__ == "__main__":
    key = jax.random.PRNGKey(0)
    kp, kq, kk, kv = jax.random.split(key, 4)

    # small shapes consistent with the module
    bsz, tgt_len, src_len = 2, 16, 24
    q_dim, k_dim, embed_dim, num_heads = 32, 48, 64, 4   # head_dim = 16

    params = init_params(kp, q_dim, k_dim, embed_dim)
    q = jax.random.normal(kq, (bsz, tgt_len, q_dim), jnp.float32)
    k = jax.random.normal(kk, (bsz, src_len, k_dim), jnp.float32)
    v = jax.random.normal(kv, (bsz, src_len, k_dim), jnp.float32)

    # mask out the last 4 source positions of batch 1
    attention_mask = jnp.ones((bsz, src_len), jnp.float32).at[1, -4:].set(0.0)

    out, attn_w = multi_head_attention(params, q, k, v, num_heads,
                                       attention_mask=attention_mask)
    jax.block_until_ready(out)
    jax.block_until_ready(attn_w)

    ref_out, ref_w = _reference(params, q, k, v, num_heads,
                                attention_mask=attention_mask)

    assert out.shape == (bsz, tgt_len, q_dim)
    assert attn_w.shape == (bsz * num_heads, tgt_len, src_len)
    assert jnp.allclose(out, ref_out, atol=2e-3, rtol=2e-3), \
        float(jnp.max(jnp.abs(out - ref_out)))
    assert jnp.allclose(attn_w, ref_w, atol=2e-3, rtol=2e-3), \
        float(jnp.max(jnp.abs(attn_w - ref_w)))

    print("KERNEL_OK")
</pallas_src>

<mosaic_0001>
module attributes {stable_mosaic.version = 11 : i64} {
  func.func @_linear_kernel(%arg0: i32, %arg1: i32, %arg2: i32, %arg3: memref<32x32xf32, #tpu.memory_space<vmem>>, %arg4: memref<32x64xf32, #tpu.memory_space<vmem>>, %arg5: memref<1x64xf32, #tpu.memory_space<vmem>>, %arg6: memref<32x64xf32, #tpu.memory_space<vmem>>) attributes {dimension_semantics = [#tpu.dimension_semantics<parallel>, #tpu.dimension_semantics<parallel>, #tpu.dimension_semantics<arbitrary>], iteration_bounds = array<i64: 1, 1, 1>, scalar_prefetch = 0 : i64, scratch_operands = 0 : i64, tpu.core_type = #tpu.core_type<tc>, window_params = [{transform_indices = @transform_0, window_bounds = array<i64: 32, 32>}, {transform_indices = @transform_1, window_bounds = array<i64: 32, 64>}, {transform_indices = @transform_2, window_bounds = array<i64: 1, 64>}, {transform_indices = @transform_3, window_bounds = array<i64: 32, 64>}]} {
    %c0_i32 = arith.constant 0 : i32
    %0 = arith.cmpi eq, %arg2, %c0_i32 : i32
    %1 = arith.extui %0 : i1 to i32
    %c0_i32_0 = arith.constant 0 : i32
    %2 = arith.cmpi ne, %1, %c0_i32_0 : i32
    scf.if %2 {
      %c0_8 = arith.constant 0 : index
      %c0_9 = arith.constant 0 : index
      %9 = vector.load %arg5[%c0_8, %c0_9] : memref<1x64xf32, #tpu.memory_space<vmem>>, vector<1x64xf32>
      %10 = vector.shape_cast %9 : vector<1x64xf32> to vector<1x64xf32>
      %11 = vector.broadcast %10 : vector<1x64xf32> to vector<32x64xf32>
      %c0_10 = arith.constant 0 : index
      %c0_11 = arith.constant 0 : index
      %12 = vector.load %arg6[%c0_10, %c0_11] : memref<32x64xf32, #tpu.memory_space<vmem>>, vector<32x64xf32>
      tpu.vector_store %arg6[%c0_10, %c0_11], %11 {strides = array<i32>} : memref<32x64xf32, #tpu.memory_space<vmem>>, vector<32x64xf32>,
    } else {
    }
    %c0 = arith.constant 0 : index
    %c0_1 = arith.constant 0 : index
    %3 = vector.load %arg3[%c0, %c0_1] : memref<32x32xf32, #tpu.memory_space<vmem>>, vector<32x32xf32>
    %c0_2 = arith.constant 0 : index
    %c0_3 = arith.constant 0 : index
    %4 = vector.load %arg4[%c0_2, %c0_3] : memref<32x64xf32, #tpu.memory_space<vmem>>, vector<32x64xf32>
    %c0_4 = arith.constant 0 : index
    %c0_5 = arith.constant 0 : index
    %5 = vector.load %arg6[%c0_4, %c0_5] : memref<32x64xf32, #tpu.memory_space<vmem>>, vector<32x64xf32>
    %cst = arith.constant dense<0.000000e+00> : vector<32x64xf32>
    %6 = tpu.matmul %3, %4, %cst {dimension_numbers = #tpu.dot_dimension_numbers<[1], [0], [0], [1], [0, 0, 1, 1], [], []>} : vector<32x32xf32>, vector<32x64xf32>, vector<32x64xf32> -> vector<32x64xf32>
    %7 = arith.addf %5, %6 : vector<32x64xf32>
    %c0_6 = arith.constant 0 : index
    %c0_7 = arith.constant 0 : index
    %8 = vector.load %arg6[%c0_6, %c0_7] : memref<32x64xf32, #tpu.memory_space<vmem>>, vector<32x64xf32>
    tpu.vector_store %arg6[%c0_6, %c0_7], %7 {strides = array<i32>} : memref<32x64xf32, #tpu.memory_space<vmem>>, vector<32x64xf32>,
    return
  }
  func.func @transform_0(%arg0: i32, %arg1: i32, %arg2: i32) -> (i32, i32) {
    %c0_i32 = arith.constant 0 : i32
    return %arg0, %arg2 : i32, i32
  }
  func.func @transform_1(%arg0: i32, %arg1: i32, %arg2: i32) -> (i32, i32) {
    %c0_i32 = arith.constant 0 : i32
    return %arg2, %arg1 : i32, i32
  }
  func.func @transform_2(%arg0: i32, %arg1: i32, %arg2: i32) -> (i32, i32) {
    %c0_i32 = arith.constant 0 : i32
    %c0_i32_0 = arith.constant 0 : i32
    return %c0_i32, %arg1 : i32, i32
  }
  func.func @transform_3(%arg0: i32, %arg1: i32, %arg2: i32) -> (i32, i32) {
    %c0_i32 = arith.constant 0 : i32
    return %arg0, %arg1 : i32, i32
  }
}

</mosaic_0001>

<bundles_post_ra>
// kernel: tpu_custom_call.1
= control target key start
LH: loop header
LB: loop body
LE: loop exit
PB: predicated region body
PF: predicated region fallthrough
CT: control target
= control target key end

     0   :  { %8 = vsyncpa [#allocation3], 0  ;;  %s356_s0 = inlined_call_operand.hbm [shape: f32[32,32], index: 0, kind: input, shape index: {}]   ;;  %s357_s1 = inlined_call_operand.hbm [shape: f32[32,64], index: 1, kind: input, shape index: {}]   ;;  %s358_s2 = inlined_call_operand.vmem [shape: f32[1,64], index: 2, kind: input, shape index: {}]   ;;  %s359_s3 = inlined_call_operand.hbm [shape: f32[32,64], index: 3, kind: output, shape index: {}]  }
   0x1   :  { %9 = vsyncpa [#allocation6], 0 }
   0x2   :  { %10 = vsyncpa [#allocation4], 0  ;;  %s302_s12 = smov [#allocation2]  }
   0x3   :  { %s16_s13 = sshll.u32 %s302_s12, 4  ;;  %s17_s13 = int_to_ptr.vmem [resolvable:$true] %s16_s13 }
   0x4   :  { %s244_s14 = scalar_lea.vmem %s17_s13, 512  ;;  %p249_p1 = scmp.lt.s32.totalorder %s17_s13, %s17_s13 }
   0x5   :  { %p245_p0 = scmp.ne.s32.totalorder %s17_s13, %s244_s14  ;;  %p250_p2 = scmp.lt.s32.totalorder %s244_s14, %s244_s14 }
   0x7   :  { %p251_p3 = por %p250_p2, %p249_p1 }
   0x9   :  { %p252_p4 = pnand %p251_p3, %p245_p0 }
   0xb   :  { %255 = shalt.err (!%p252_p4)
}
   0xc   :  { %s303_s15 = smov 128   ;;  %s304_s16 = smov 8  }
   0xd   :  { %22 = dma.hbm_to_vmem [thread:$0]  %s356_s0, 512, %s17_s13, [#allocation3], %s303_s15, %s303_s15, %s304_s16  }
   0xe   :  { %s305_s19 = smov [#allocation5]  }
   0xf   :  { %s28_s20 = sshll.u32 %s305_s19, 4  ;;  %s29_s20 = int_to_ptr.vmem [resolvable:$true] %s28_s20 }
  0x10   :  { %s264_s21 = scalar_lea.vmem %s29_s20, 512  ;;  %p269_p6 = scmp.lt.s32.totalorder %s29_s20, %s29_s20 }
  0x11   :  { %p265_p5 = scmp.ne.s32.totalorder %s29_s20, %s264_s21  ;;  %p270_p7 = scmp.lt.s32.totalorder %s264_s21, %s264_s21 }
  0x13   :  { %p271_p8 = por %p270_p7, %p269_p6 }
  0x15   :  { %p272_p9 = pnand %p271_p8, %p265_p5 }
  0x17   :  { %275 = shalt.err (!%p272_p9)
}
  0x18   :  { %34 = dma.hbm_to_vmem [thread:$0]  %s357_s1, 512, %s29_s20, [#allocation6], %s303_s15, %s303_s15, %s304_s16  }
  0x19   :  { %296 = dma.done.wait [#allocation3], 512  }
  0x1a   :  { %297 = vsyncadd [#allocation3], 4294966784 }
  0x1b   :  { %298 = dma.done.wait [#allocation6], 512  }
  0x1c   :  { %299 = vsyncadd [#allocation6], 4294966784  ;;  %v66_v0 = vld [vmem:[#allocation5 + $0x18] sm:$0xff]  ;;  %v65_v1 = vld [vmem:[#allocation5 + $0x10] sm:$0xff]  ;;  %vm54_vm0 = vcmask 523264   ;;  %vm71_vm1 = vcmask 261120  }
  0x1d   :  { %209 = vmatprep.subr.mxu0 %v66_v0  ;;  %223 = vmatprep.subr.mxu1 %v66_v0  ;;  %v64_v2 = vld [vmem:[#allocation5 + $0x8] sm:$0xff]  ;;  %v196_v3 = vld [vmem:[%s358_s2] ss:$0 sm:$0xff]  ;;  %v61_v6 = vld [vmem:[#allocation2 + $0x10] sm:$0xff]  ;;  %s306_s1 = smov [#allocation7]  }
  0x1e   :  { %210 = vmatpush3.msra.mxu0 %v66_v0  ;;  %227 = vmatpush3.msra.mxu1 %v66_v0  ;;  %56 = vst.msk [vmem:[#allocation7 + $0x8] sm:$0xff] %vm54_vm0, %v196_v3  ;;  %55 = vst.msk [vmem:[#allocation7] sm:$0xff] %vm54_vm0, %v196_v3  ;;  %v63_v4 = vld [vmem:[#allocation5] sm:$0xff]  ;;  %v60_v7 = vld [vmem:[#allocation2 + $0x8] sm:$0xff]  ;;  %s183_s2 = sshll.u32 %s306_s1, 4  ;;  %s184_s2 = int_to_ptr.vmem [resolvable:$true] %s183_s2 }
  0x1f   :  { %211 = vmatprep.subr.mxu0 %v65_v1  ;;  %224 = vmatprep.subr.mxu1 %v65_v1  ;;  %57 = vst.msk [vmem:[#allocation7 + $0x10] sm:$0xff] %vm54_vm0, %v196_v3  ;;  %58 = vst.msk [vmem:[#allocation7 + $0x18] sm:$0xff] %vm54_vm0, %v196_v3  ;;  %v59_v5 = vld [vmem:[#allocation2] sm:$0xff]  ;;  %v62_v8 = vld [vmem:[#allocation2 + $0x18] sm:$0xff]  ;;  %s276_s25 = scalar_lea.vmem %s184_s2, 512  ;;  %p281_p11 = scmp.lt.s32.totalorder %s184_s2, %s184_s2 }
  0x20   :  { %212 = vmatpush3.msra.mxu0 %v65_v1  ;;  %228 = vmatpush3.msra.mxu1 %v65_v1  ;;  %p277_p10 = scmp.ne.s32.totalorder %s184_s2, %s276_s25  ;;  %p282_p12 = scmp.lt.s32.totalorder %s276_s25, %s276_s25 }
  0x21   :  { %213 = vmatprep.subr.mxu0 %v64_v2  ;;  %225 = vmatprep.subr.mxu1 %v64_v2 }
  0x22   :  { %214 = vmatpush3.msra.mxu0 %v64_v2  ;;  %229 = vmatpush3.msra.mxu1 %v64_v2  ;;  %p283_p13 = por %p282_p12, %p281_p11 }
  0x23   :  { %215 = vmatprep.subr.mxu0 %v63_v4  ;;  %226 = vmatprep.subr.mxu1 %v63_v4 }
  0x24   :  { %216 = vmatpush3.msra.mxu0 %v63_v4  ;;  %230 = vmatpush3.msra.mxu1 %v63_v4  ;;  %p284_p0 = pnand %p283_p13, %p277_p10 }
  0x25   :  { %217 = vmatprep.mubr.msk.f32.mxu0 %vm71_vm1, %v59_v5  ;;  %220 = vmatprep.mubr.msk.f32.mxu1 %vm71_vm1, %v61_v6  ;;  %v68_v9 = vld [vmem:[#allocation7 + $0x8] sm:$0xff]  ;;  %v67_v13 = vld [vmem:[#allocation7] sm:$0xff] }
  0x26   :  { %218 = vmatmul.mubr.msk.f32.vlgmr.msra.gmra.mxu0 %vm71_vm1, %v60_v7  ;;  %221 = vmatmul.mubr.msk.f32.vlgmr.msra.gmra.mxu1 %vm71_vm1, %v62_v8  ;;  %v70_v10 = vld [vmem:[#allocation7 + $0x18] sm:$0xff]  ;;  %v69_v14 = vld [vmem:[#allocation7 + $0x10] sm:$0xff] }
  0xe6   :  { %v219_v11 = vpop.f32.mrf.mxu0  ;;  %v222_v12 = vpop.f32.mrf.mxu1 }
  0xe7   :  { %v170_v15 = vadd.f32 %v219_v11, %v68_v9  ;;  %v172_v16 = vadd.f32 %v222_v12, %v70_v10 }
  0xe8   :  { %v150_v17 = vpop.f32.mrf.mxu0  ;;  %v160_v18 = vpop.f32.mrf.mxu1 }
  0xe9   :  { %175 = vst.msk [vmem:[#allocation7 + $0x8] sm:$0xff] %vm54_vm0, %v170_v15  ;;  %177 = vst.msk [vmem:[#allocation7 + $0x18] sm:$0xff] %vm54_vm0, %v172_v16  ;;  %v169_v19 = vadd.f32 %v150_v17, %v67_v13  ;;  %v171_v20 = vadd.f32 %v160_v18, %v69_v14 }
  0xeb   :  { %174 = vst.msk [vmem:[#allocation7] sm:$0xff] %vm54_vm0, %v169_v19  ;;  %176 = vst.msk [vmem:[#allocation7 + $0x10] sm:$0xff] %vm54_vm0, %v171_v20 }
  0xec   :  { %287 = shalt.err (!%p284_p0)
}
  0xed   :  { %189 = dma.vmem_to_hbm [thread:$0]  %s184_s2, 512, %s359_s3, [#allocation4], %s303_s15, %s303_s15, %s304_s16  }
  0xee   :  { %300 = dma.done.wait [#allocation4], 512  }
  0xef   :  { %301 = vsyncadd [#allocation4], 4294966784 }
  0xf0   :  { %193 = vsyncpa [#allocation3], 1 }
  0xf1   :  { %194 = vsyncpa [#allocation6], 1 }
  0xf2   :  { %195 = vsyncpa [#allocation4], 1 }

</bundles_post_ra>
